<compile_context>
chip_gen: v5e
topology: v5e:2x2
jax: 0.10.0
libtpu: 0.0.40
codegen_flags: <defaults>
</compile_context>

<pallas_src>
import jax
import jax.numpy as jnp
import numpy as np
from jax.experimental import pallas as pl
from jax.experimental.pallas import tpu as pltpu

# ----------------------------- problem sizes -----------------------------
OBS_DIM = 32        # LSTM input size (observation dim)
HIDDEN = 32         # LSTM hidden size
NUM_LAYERS = 2      # LSTM layers
ACTOR_H0 = 64       # actor MLP hidden dims
ACTOR_H1 = 32
NUM_ACTIONS = 12
ACT_PAD = 128       # lane-dense padded width used inside the kernel


# ------------------------------- kernel ----------------------------------
def _policy_kernel(x_ref, h0_ref, c0_ref, wl_ref, b_ref, aw_ref,
                   act_ref, h_out_ref, c_out_ref,
                   h_scr, c_scr):
    H = HIDDEN
    t = pl.program_id(1)

    # Initialize carried recurrent state from the module's buffers at step 0.
    @pl.when(t == 0)
    def _():
        h_scr[...] = h0_ref[...]
        c_scr[...] = c0_ref[...]

    x = x_ref[0]                                  # (B, OBS_DIM)

    def lstm_layer(xin, h_prev, c_prev, wih, whh, bias):
        # gates = x @ W_ih + h @ W_hh + b  (no activation concat -> no XLU shuffle)
        gates = (jnp.dot(xin, wih, preferred_element_type=jnp.float32)
                 + jnp.dot(h_prev, whh, preferred_element_type=jnp.float32)
                 + bias)                          # (B, 4H)
        # Single sigmoid pass over the whole gates vreg.  The g-gate columns of
        # W/b were pre-scaled by 2, so tanh(z) = 2*sigmoid(2z) - 1 (exact).
        sig = jax.nn.sigmoid(gates)
        i = sig[:, 0 * H:1 * H]
        f = sig[:, 1 * H:2 * H]
        g = 2.0 * sig[:, 2 * H:3 * H] - 1.0
        o = sig[:, 3 * H:4 * H]
        c_new = f * c_prev + i * g
        h_new = o * jnp.tanh(c_new)
        return h_new, c_new

    h0, c0 = lstm_layer(x,  h_scr[0], c_scr[0], wl_ref[0], wl_ref[1],
                        b_ref[0:1, :4 * H])
    h1, c1 = lstm_layer(h0, h_scr[1], c_scr[1], wl_ref[2], wl_ref[3],
                        b_ref[1:2, :4 * H])

    # Carry state in VMEM scratch (no per-step HBM writeback).
    h_scr[0] = h0
    h_scr[1] = h1
    c_scr[0] = c0
    c_scr[1] = c1

    # Actor MLP: Linear -> ELU -> Linear -> ELU -> Linear, all lane-padded to
    # 128 so every intermediate / the output store is an unmasked vst.
    # (ELU as exp(v)-1 matches the reference below; not bit-exact to expm1.)
    def elu(v):
        return jnp.where(v > 0.0, v, jnp.exp(v) - 1.0)

    a = elu(jnp.dot(h1, aw_ref[0, 0:H, :], preferred_element_type=jnp.float32)
            + b_ref[2:3, :])
    a = elu(jnp.dot(a, aw_ref[1], preferred_element_type=jnp.float32)
            + b_ref[3:4, :])
    act_ref[0] = (jnp.dot(a, aw_ref[2], preferred_element_type=jnp.float32)
                  + b_ref[4:5, :])

    # Final state writeback only at the last time step.
    @pl.when(t == pl.num_programs(1) - 1)
    def _():
        h_out_ref[...] = h_scr[...]
        c_out_ref[...] = c_scr[...]


# ------------------------------- wrapper ----------------------------------
@jax.jit
def policy_rollout(xs, h0, c0, wl, b_slab, aw):
    """Run T recurrent policy steps for B environments.

    xs: (T, B, OBS_DIM); h0, c0: (NUM_LAYERS, B, HIDDEN)
    Returns (actions (T, B, NUM_ACTIONS), h_final, c_final).
    T = 1, B = 1 reproduces the original module's single forward() call.
    """
    T, B, obs = xs.shape
    BE = B if B <= 8 else 8          # env block: one sublane group when possible
    assert B % BE == 0
    n_eb = B // BE

    grid = (n_eb, T)                 # env blocks parallel (v7x 2 TCs), time serial

    in_specs = [
        pl.BlockSpec((1, BE, obs), lambda e, t: (t, e, 0)),                    # x
        pl.BlockSpec((NUM_LAYERS, BE, HIDDEN), lambda e, t: (0, e, 0)),        # h init
        pl.BlockSpec((NUM_LAYERS, BE, HIDDEN), lambda e, t: (0, e, 0)),        # c init
        pl.BlockSpec((2 * NUM_LAYERS, HIDDEN, 4 * HIDDEN),
                     lambda e, t: (0, 0, 0)),                                  # LSTM W slab
        pl.BlockSpec((8, ACT_PAD), lambda e, t: (0, 0)),                       # bias slab
        pl.BlockSpec((3, ACT_PAD, ACT_PAD), lambda e, t: (0, 0, 0)),           # actor slab
    ]
    out_specs = (
        pl.BlockSpec((1, BE, ACT_PAD), lambda e, t: (t, e, 0)),                # actions
        pl.BlockSpec((NUM_LAYERS, BE, HIDDEN), lambda e, t: (0, e, 0)),        # h final
        pl.BlockSpec((NUM_LAYERS, BE, HIDDEN), lambda e, t: (0, e, 0)),        # c final
    )
    out_shapes = (
        jax.ShapeDtypeStruct((T, B, ACT_PAD), jnp.float32),
        jax.ShapeDtypeStruct((NUM_LAYERS, B, HIDDEN), jnp.float32),
        jax.ShapeDtypeStruct((NUM_LAYERS, B, HIDDEN), jnp.float32),
    )

    acts_pad, h_new, c_new = pl.pallas_call(
        _policy_kernel,
        grid=grid,
        out_shape=out_shapes,
        in_specs=in_specs,
        out_specs=out_specs,
        scratch_shapes=[
            pltpu.VMEM((NUM_LAYERS, BE, HIDDEN), jnp.float32),   # carried h
            pltpu.VMEM((NUM_LAYERS, BE, HIDDEN), jnp.float32),   # carried c
        ],
        compiler_params=pltpu.CompilerParams(
            dimension_semantics=("parallel", "arbitrary")),
    )(xs, h0, c0, wl, b_slab, aw)

    return acts_pad[..., :NUM_ACTIONS], h_new, c_new


# --------------------------- parameter setup ------------------------------
def make_params(key):
    """Deterministic synthetic weights in math layout (x @ W, biases as vectors)."""
    ks = jax.random.split(key, 14)
    s = 0.1

    def w(k, shape):
        return s * jax.random.normal(k, shape, dtype=jnp.float32)

    wih0 = w(ks[0], (OBS_DIM, 4 * HIDDEN))
    whh0 = w(ks[1], (HIDDEN, 4 * HIDDEN))
    b_ih0 = w(ks[2], (4 * HIDDEN,))
    b_hh0 = w(ks[3], (4 * HIDDEN,))
    wih1 = w(ks[4], (HIDDEN, 4 * HIDDEN))
    whh1 = w(ks[5], (HIDDEN, 4 * HIDDEN))
    b_ih1 = w(ks[6], (4 * HIDDEN,))
    b_hh1 = w(ks[7], (4 * HIDDEN,))
    aw0 = w(ks[8], (HIDDEN, ACTOR_H0));   ab0 = w(ks[9], (ACTOR_H0,))
    aw1 = w(ks[10], (ACTOR_H0, ACTOR_H1)); ab1 = w(ks[11], (ACTOR_H1,))
    aw2 = w(ks[12], (ACTOR_H1, NUM_ACTIONS)); ab2 = w(ks[13], (NUM_ACTIONS,))
    return (wih0, whh0, b_ih0, b_hh0, wih1, whh1, b_ih1, b_hh1,
            aw0, ab0, aw1, ab1, aw2, ab2)


def fuse_params(params):
    """Pack 14 raw tensors into 3 kernel slabs; pre-scale g-gate for tanh-via-sigmoid."""
    (wih0, whh0, b_ih0, b_hh0, wih1, whh1, b_ih1, b_hh1,
     aw0, ab0, aw1, ab1, aw2, ab2) = params
    H = HIDDEN
    assert OBS_DIM == HIDDEN, "weight slab packing assumes OBS_DIM == HIDDEN"
    assert 4 * HIDDEN <= ACT_PAD

    def prescale(t):
        # tanh(z) = 2*sigmoid(2z) - 1: double the cell-candidate gate columns.
        return t.at[..., 2 * H:3 * H].multiply(2.0)

    # LSTM weight slab: (4, H, 4H) = [W_ih0, W_hh0, W_ih1, W_hh1]
    wl = jnp.stack([prescale(wih0), prescale(whh0),
                    prescale(wih1), prescale(whh1)], axis=0)

    def lane_pad(v):
        v = v[None, :] if v.ndim == 1 else v
        return jnp.pad(v, ((0, 0), (0, ACT_PAD - v.shape[-1])))

    # Bias slab (8, 128): rows 0/1 = LSTM biases (b_ih + b_hh, g-gate prescaled),
    # rows 2/3/4 = actor biases (zero lane-padded), rows 5-7 unused.
    b_slab = jnp.concatenate([
        lane_pad(prescale(b_ih0 + b_hh0)),
        lane_pad(prescale(b_ih1 + b_hh1)),
        lane_pad(ab0), lane_pad(ab1), lane_pad(ab2),
        jnp.zeros((3, ACT_PAD), jnp.float32),
    ], axis=0)

    # Actor weight slab (3, 128, 128): each layer zero-padded (zero rows/cols
    # keep padded lanes exactly 0 through the ELUs).
    def pad2(w_):
        return jnp.pad(w_, ((0, ACT_PAD - w_.shape[0]), (0, ACT_PAD - w_.shape[1])))

    aw = jnp.stack([pad2(aw0), pad2(aw1), pad2(aw2)], axis=0)
    return wl, b_slab, aw


# ------------------------- pure-JAX reference ------------------------------
def ref_rollout(xs, h, c, params):
    """Unrolled reference following the PyTorch LSTM + actor math directly."""
    (wih0, whh0, b_ih0, b_hh0, wih1, whh1, b_ih1, b_hh1,
     aw0, ab0, aw1, ab1, aw2, ab2) = params
    H = HIDDEN

    def cell(xin, hp, cp, wih, whh, bih, bhh):
        g = xin @ wih + hp @ whh + bih + bhh
        i = jax.nn.sigmoid(g[:, :H])
        f = jax.nn.sigmoid(g[:, H:2 * H])
        gg = jnp.tanh(g[:, 2 * H:3 * H])
        o = jax.nn.sigmoid(g[:, 3 * H:])
        cn = f * cp + i * gg
        return o * jnp.tanh(cn), cn

    def elu(v):
        return jnp.where(v > 0.0, v, jnp.exp(v) - 1.0)

    acts = []
    for t in range(xs.shape[0]):
        h0, c0 = cell(xs[t], h[0], c[0], wih0, whh0, b_ih0, b_hh0)
        h1, c1 = cell(h0, h[1], c[1], wih1, whh1, b_ih1, b_hh1)
        h = jnp.stack([h0, h1], 0)
        c = jnp.stack([c0, c1], 0)
        a = elu(h1 @ aw0 + ab0)
        a = elu(a @ aw1 + ab1)
        acts.append(a @ aw2 + ab2)
    return jnp.stack(acts, 0), h, c


# --------------------------------- main ------------------------------------
if __name__ == "__main__":
    key = jax.random.PRNGKey(0)
    k_x, k_p = jax.random.split(key)

    T, B = 8, 4
    xs = jax.random.normal(k_x, (T, B, OBS_DIM), dtype=jnp.float32)
    # register_buffer zeros -> initial hidden / cell state are zero
    h = jnp.zeros((NUM_LAYERS, B, HIDDEN), jnp.float32)
    c = jnp.zeros((NUM_LAYERS, B, HIDDEN), jnp.float32)

    params = make_params(k_p)
    wl, b_slab, aw = fuse_params(params)

    acts, h_new, c_new = policy_rollout(xs, h, c, wl, b_slab, aw)
    jax.block_until_ready((acts, h_new, c_new))

    acts_r, h_r, c_r = ref_rollout(xs, h, c, params)
    np.testing.assert_allclose(np.asarray(acts), np.asarray(acts_r), rtol=1e-4, atol=1e-4)
    np.testing.assert_allclose(np.asarray(h_new), np.asarray(h_r), rtol=1e-4, atol=1e-4)
    np.testing.assert_allclose(np.asarray(c_new), np.asarray(c_r), rtol=1e-4, atol=1e-4)

    # Second rollout carrying nonzero state (exercises the t==0 scratch init).
    acts2, h2, c2 = policy_rollout(xs, h_new, c_new, wl, b_slab, aw)
    jax.block_until_ready((acts2, h2, c2))
    acts_r2, h_r2, c_r2 = ref_rollout(xs, h_r, c_r, params)
    np.testing.assert_allclose(np.asarray(acts2), np.asarray(acts_r2), rtol=1e-4, atol=1e-4)
    np.testing.assert_allclose(np.asarray(h2), np.asarray(h_r2), rtol=1e-4, atol=1e-4)
    np.testing.assert_allclose(np.asarray(c2), np.asarray(c_r2), rtol=1e-4, atol=1e-4)

    print("KERNEL_OK")
</pallas_src>

<mosaic_0001>
module attributes {stable_mosaic.version = 11 : i64} {
  func.func @_policy_kernel(%arg0: i32, %arg1: i32, %arg2: memref<1x4x32xf32, #tpu.memory_space<vmem>>, %arg3: memref<2x4x32xf32, #tpu.memory_space<vmem>>, %arg4: memref<2x4x32xf32, #tpu.memory_space<vmem>>, %arg5: memref<4x32x128xf32, #tpu.memory_space<vmem>>, %arg6: memref<8x128xf32, #tpu.memory_space<vmem>>, %arg7: memref<3x128x128xf32, #tpu.memory_space<vmem>>, %arg8: memref<1x4x128xf32, #tpu.memory_space<vmem>>, %arg9: memref<2x4x32xf32, #tpu.memory_space<vmem>>, %arg10: memref<2x4x32xf32, #tpu.memory_space<vmem>>, %arg11: memref<2x4x32xf32, #tpu.memory_space<vmem>>, %arg12: memref<2x4x32xf32, #tpu.memory_space<vmem>>) attributes {dimension_semantics = [#tpu.dimension_semantics<parallel>, #tpu.dimension_semantics<arbitrary>], iteration_bounds = array<i64: 1, 8>, scalar_prefetch = 0 : i64, scratch_operands = 2 : i64, tpu.core_type = #tpu.core_type<tc>, window_params = [{transform_indices = @transform_0, window_bounds = array<i64: 1, 4, 32>}, {transform_indices = @transform_1, window_bounds = array<i64: 2, 4, 32>}, {transform_indices = @transform_2, window_bounds = array<i64: 2, 4, 32>}, {pipeline_mode = #tpu.pipeline_mode<synchronous>, transform_indices = @transform_3, window_bounds = array<i64: 4, 32, 128>}, {pipeline_mode = #tpu.pipeline_mode<synchronous>, transform_indices = @transform_4, window_bounds = array<i64: 8, 128>}, {pipeline_mode = #tpu.pipeline_mode<synchronous>, transform_indices = @transform_5, window_bounds = array<i64: 3, 128, 128>}, {transform_indices = @transform_6, window_bounds = array<i64: 1, 4, 128>}, {transform_indices = @transform_7, window_bounds = array<i64: 2, 4, 32>}, {transform_indices = @transform_8, window_bounds = array<i64: 2, 4, 32>}]} {
    %c0_i32 = arith.constant 0 : i32
    %0 = arith.cmpi eq, %arg1, %c0_i32 : i32
    %1 = arith.extui %0 : i1 to i32
    %c0_i32_0 = arith.constant 0 : i32
    %2 = arith.cmpi ne, %1, %c0_i32_0 : i32
    scf.if %2 {
      %c0_74 = arith.constant 0 : index
      %c0_75 = arith.constant 0 : index
      %c0_76 = arith.constant 0 : index
      %117 = vector.load %arg3[%c0_74, %c0_75, %c0_76] : memref<2x4x32xf32, #tpu.memory_space<vmem>>, vector<2x4x32xf32>
      %c0_77 = arith.constant 0 : index
      %c0_78 = arith.constant 0 : index
      %c0_79 = arith.constant 0 : index
      %118 = vector.load %arg11[%c0_77, %c0_78, %c0_79] : memref<2x4x32xf32, #tpu.memory_space<vmem>>, vector<2x4x32xf32>
      tpu.vector_store %arg11[%c0_77, %c0_78, %c0_79], %117 {strides = array<i32>} : memref<2x4x32xf32, #tpu.memory_space<vmem>>, vector<2x4x32xf32>,
      %c0_80 = arith.constant 0 : index
      %c0_81 = arith.constant 0 : index
      %c0_82 = arith.constant 0 : index
      %119 = vector.load %arg4[%c0_80, %c0_81, %c0_82] : memref<2x4x32xf32, #tpu.memory_space<vmem>>, vector<2x4x32xf32>
      %c0_83 = arith.constant 0 : index
      %c0_84 = arith.constant 0 : index
      %c0_85 = arith.constant 0 : index
      %120 = vector.load %arg12[%c0_83, %c0_84, %c0_85] : memref<2x4x32xf32, #tpu.memory_space<vmem>>, vector<2x4x32xf32>
      tpu.vector_store %arg12[%c0_83, %c0_84, %c0_85], %119 {strides = array<i32>} : memref<2x4x32xf32, #tpu.memory_space<vmem>>, vector<2x4x32xf32>,
    } else {
    }
    %c0 = arith.constant 0 : index
    %c0_1 = arith.constant 0 : index
    %c0_2 = arith.constant 0 : index
    %3 = vector.load %arg2[%c0, %c0_1, %c0_2] : memref<1x4x32xf32, #tpu.memory_space<vmem>>, vector<1x4x32xf32>
    %4 = vector.shape_cast %3 : vector<1x4x32xf32> to vector<4x32xf32>
    %c0_3 = arith.constant 0 : index
    %c0_4 = arith.constant 0 : index
    %c0_5 = arith.constant 0 : index
    %5 = vector.load %arg11[%c0_3, %c0_4, %c0_5] : memref<2x4x32xf32, #tpu.memory_space<vmem>>, vector<1x4x32xf32>
    %6 = vector.shape_cast %5 : vector<1x4x32xf32> to vector<4x32xf32>
    %c0_6 = arith.constant 0 : index
    %c0_7 = arith.constant 0 : index
    %c0_8 = arith.constant 0 : index
    %7 = vector.load %arg12[%c0_6, %c0_7, %c0_8] : memref<2x4x32xf32, #tpu.memory_space<vmem>>, vector<1x4x32xf32>
    %8 = vector.shape_cast %7 : vector<1x4x32xf32> to vector<4x32xf32>
    %c0_9 = arith.constant 0 : index
    %c0_10 = arith.constant 0 : index
    %c0_11 = arith.constant 0 : index
    %9 = vector.load %arg5[%c0_9, %c0_10, %c0_11] : memref<4x32x128xf32, #tpu.memory_space<vmem>>, vector<1x32x128xf32>
    %10 = vector.shape_cast %9 : vector<1x32x128xf32> to vector<32x128xf32>
    %c1 = arith.constant 1 : index
    %c0_12 = arith.constant 0 : index
    %c0_13 = arith.constant 0 : index
    %11 = vector.load %arg5[%c1, %c0_12, %c0_13] : memref<4x32x128xf32, #tpu.memory_space<vmem>>, vector<1x32x128xf32>
    %12 = vector.shape_cast %11 : vector<1x32x128xf32> to vector<32x128xf32>
    %c0_14 = arith.constant 0 : index
    %c0_15 = arith.constant 0 : index
    %13 = vector.load %arg6[%c0_14, %c0_15] : memref<8x128xf32, #tpu.memory_space<vmem>>, vector<1x128xf32>
    %cst = arith.constant dense<0.000000e+00> : vector<4x128xf32>
    %14 = tpu.matmul %4, %10, %cst {dimension_numbers = #tpu.dot_dimension_numbers<[1], [0], [0], [1], [0, 0, 1, 1], [], []>} : vector<4x32xf32>, vector<32x128xf32>, vector<4x128xf32> -> vector<4x128xf32>
    %cst_16 = arith.constant dense<0.000000e+00> : vector<4x128xf32>
    %15 = tpu.matmul %6, %12, %cst_16 {dimension_numbers = #tpu.dot_dimension_numbers<[1], [0], [0], [1], [0, 0, 1, 1], [], []>} : vector<4x32xf32>, vector<32x128xf32>, vector<4x128xf32> -> vector<4x128xf32>
    %16 = arith.addf %14, %15 : vector<4x128xf32>
    %17 = vector.broadcast %13 : vector<1x128xf32> to vector<4x128xf32>
    %18 = arith.addf %16, %17 : vector<4x128xf32>
    %19 = arith.negf %18 : vector<4x128xf32>
    %20 = math.exp %19 : vector<4x128xf32>
    %cst_17 = arith.constant 1.000000e+00 : f32
    %21 = vector.broadcast %cst_17 : f32 to vector<4x128xf32>
    %22 = arith.addf %21, %20 : vector<4x128xf32>
    %23 = arith.divf %21, %22 : vector<4x128xf32>
    %24 = vector.extract_strided_slice %23 {offsets = [0, 0], sizes = [4, 32], strides = [1, 1]} : vector<4x128xf32> to vector<4x32xf32>
    %25 = vector.extract_strided_slice %23 {offsets = [0, 32], sizes = [4, 32], strides = [1, 1]} : vector<4x128xf32> to vector<4x32xf32>
    %26 = vector.extract_strided_slice %23 {offsets = [0, 64], sizes = [4, 32], strides = [1, 1]} : vector<4x128xf32> to vector<4x32xf32>
    %cst_18 = arith.constant 2.000000e+00 : f32
    %27 = vector.broadcast %cst_18 : f32 to vector<4x32xf32>
    %28 = arith.mulf %27, %26 : vector<4x32xf32>
    %cst_19 = arith.constant 1.000000e+00 : f32
    %29 = vector.broadcast %cst_19 : f32 to vector<4x32xf32>
    %30 = arith.subf %28, %29 : vector<4x32xf32>
    %31 = vector.extract_strided_slice %23 {offsets = [0, 96], sizes = [4, 32], strides = [1, 1]} : vector<4x128xf32> to vector<4x32xf32>
    %32 = arith.mulf %25, %8 : vector<4x32xf32>
    %33 = arith.mulf %24, %30 : vector<4x32xf32>
    %34 = arith.addf %32, %33 : vector<4x32xf32>
    %35 = math.tanh %34 : vector<4x32xf32>
    %36 = arith.mulf %31, %35 : vector<4x32xf32>
    %c1_20 = arith.constant 1 : index
    %c0_21 = arith.constant 0 : index
    %c0_22 = arith.constant 0 : index
    %37 = vector.load %arg11[%c1_20, %c0_21, %c0_22] : memref<2x4x32xf32, #tpu.memory_space<vmem>>, vector<1x4x32xf32>
    %38 = vector.shape_cast %37 : vector<1x4x32xf32> to vector<4x32xf32>
    %c1_23 = arith.constant 1 : index
    %c0_24 = arith.constant 0 : index
    %c0_25 = arith.constant 0 : index
    %39 = vector.load %arg12[%c1_23, %c0_24, %c0_25] : memref<2x4x32xf32, #tpu.memory_space<vmem>>, vector<1x4x32xf32>
    %40 = vector.shape_cast %39 : vector<1x4x32xf32> to vector<4x32xf32>
    %c2 = arith.constant 2 : index
    %c0_26 = arith.constant 0 : index
    %c0_27 = arith.constant 0 : index
    %41 = vector.load %arg5[%c2, %c0_26, %c0_27] : memref<4x32x128xf32, #tpu.memory_space<vmem>>, vector<1x32x128xf32>
    %42 = vector.shape_cast %41 : vector<1x32x128xf32> to vector<32x128xf32>
    %c3 = arith.constant 3 : index
    %c0_28 = arith.constant 0 : index
    %c0_29 = arith.constant 0 : index
    %43 = vector.load %arg5[%c3, %c0_28, %c0_29] : memref<4x32x128xf32, #tpu.memory_space<vmem>>, vector<1x32x128xf32>
    %44 = vector.shape_cast %43 : vector<1x32x128xf32> to vector<32x128xf32>
    %c1_30 = arith.constant 1 : index
    %c0_31 = arith.constant 0 : index
    %45 = vector.load %arg6[%c1_30, %c0_31] : memref<8x128xf32, #tpu.memory_space<vmem>>, vector<1x128xf32>
    %cst_32 = arith.constant dense<0.000000e+00> : vector<4x128xf32>
    %46 = tpu.matmul %36, %42, %cst_32 {dimension_numbers = #tpu.dot_dimension_numbers<[1], [0], [0], [1], [0, 0, 1, 1], [], []>} : vector<4x32xf32>, vector<32x128xf32>, vector<4x128xf32> -> vector<4x128xf32>
    %cst_33 = arith.constant dense<0.000000e+00> : vector<4x128xf32>
    %47 = tpu.matmul %38, %44, %cst_33 {dimension_numbers = #tpu.dot_dimension_numbers<[1], [0], [0], [1], [0, 0, 1, 1], [], []>} : vector<4x32xf32>, vector<32x128xf32>, vector<4x128xf32> -> vector<4x128xf32>
    %48 = arith.addf %46, %47 : vector<4x128xf32>
    %49 = vector.broadcast %45 : vector<1x128xf32> to vector<4x128xf32>
    %50 = arith.addf %48, %49 : vector<4x128xf32>
    %51 = arith.negf %50 : vector<4x128xf32>
    %52 = math.exp %51 : vector<4x128xf32>
    %cst_34 = arith.constant 1.000000e+00 : f32
    %53 = vector.broadcast %cst_34 : f32 to vector<4x128xf32>
    %54 = arith.addf %53, %52 : vector<4x128xf32>
    %55 = arith.divf %53, %54 : vector<4x128xf32>
    %56 = vector.extract_strided_slice %55 {offsets = [0, 0], sizes = [4, 32], strides = [1, 1]} : vector<4x128xf32> to vector<4x32xf32>
    %57 = vector.extract_strided_slice %55 {offsets = [0, 32], sizes = [4, 32], strides = [1, 1]} : vector<4x128xf32> to vector<4x32xf32>
    %58 = vector.extract_strided_slice %55 {offsets = [0, 64], sizes = [4, 32], strides = [1, 1]} : vector<4x128xf32> to vector<4x32xf32>
    %cst_35 = arith.constant 2.000000e+00 : f32
    %59 = vector.broadcast %cst_35 : f32 to vector<4x32xf32>
    %60 = arith.mulf %59, %58 : vector<4x32xf32>
    %cst_36 = arith.constant 1.000000e+00 : f32
    %61 = vector.broadcast %cst_36 : f32 to vector<4x32xf32>
    %62 = arith.subf %60, %61 : vector<4x32xf32>
    %63 = vector.extract_strided_slice %55 {offsets = [0, 96], sizes = [4, 32], strides = [1, 1]} : vector<4x128xf32> to vector<4x32xf32>
    %64 = arith.mulf %57, %40 : vector<4x32xf32>
    %65 = arith.mulf %56, %62 : vector<4x32xf32>
    %66 = arith.addf %64, %65 : vector<4x32xf32>
    %67 = math.tanh %66 : vector<4x32xf32>
    %68 = arith.mulf %63, %67 : vector<4x32xf32>
    %c0_37 = arith.constant 0 : index
    %c0_38 = arith.constant 0 : index
    %c0_39 = arith.constant 0 : index
    %69 = vector.load %arg11[%c0_37, %c0_38, %c0_39] : memref<2x4x32xf32, #tpu.memory_space<vmem>>, vector<1x4x32xf32>
    %70 = vector.shape_cast %69 : vector<1x4x32xf32> to vector<4x32xf32>
    %71 = vector.shape_cast %36 : vector<4x32xf32> to vector<1x4x32xf32>
    tpu.vector_store %arg11[%c0_37, %c0_38, %c0_39], %71 {strides = array<i32>} : memref<2x4x32xf32, #tpu.memory_space<vmem>>, vector<1x4x32xf32>,
    %c1_40 = arith.constant 1 : index
    %c0_41 = arith.constant 0 : index
    %c0_42 = arith.constant 0 : index
    %72 = vector.load %arg11[%c1_40, %c0_41, %c0_42] : memref<2x4x32xf32, #tpu.memory_space<vmem>>, vector<1x4x32xf32>
    %73 = vector.shape_cast %72 : vector<1x4x32xf32> to vector<4x32xf32>
    %74 = vector.shape_cast %68 : vector<4x32xf32> to vector<1x4x32xf32>
    tpu.vector_store %arg11[%c1_40, %c0_41, %c0_42], %74 {strides = array<i32>} : memref<2x4x32xf32, #tpu.memory_space<vmem>>, vector<1x4x32xf32>,
    %c0_43 = arith.constant 0 : index
    %c0_44 = arith.constant 0 : index
    %c0_45 = arith.constant 0 : index
    %75 = vector.load %arg12[%c0_43, %c0_44, %c0_45] : memref<2x4x32xf32, #tpu.memory_space<vmem>>, vector<1x4x32xf32>
    %76 = vector.shape_cast %75 : vector<1x4x32xf32> to vector<4x32xf32>
    %77 = vector.shape_cast %34 : vector<4x32xf32> to vector<1x4x32xf32>
    tpu.vector_store %arg12[%c0_43, %c0_44, %c0_45], %77 {strides = array<i32>} : memref<2x4x32xf32, #tpu.memory_space<vmem>>, vector<1x4x32xf32>,
    %c1_46 = arith.constant 1 : index
    %c0_47 = arith.constant 0 : index
    %c0_48 = arith.constant 0 : index
    %78 = vector.load %arg12[%c1_46, %c0_47, %c0_48] : memref<2x4x32xf32, #tpu.memory_space<vmem>>, vector<1x4x32xf32>
    %79 = vector.shape_cast %78 : vector<1x4x32xf32> to vector<4x32xf32>
    %80 = vector.shape_cast %66 : vector<4x32xf32> to vector<1x4x32xf32>
    tpu.vector_store %arg12[%c1_46, %c0_47, %c0_48], %80 {strides = array<i32>} : memref<2x4x32xf32, #tpu.memory_space<vmem>>, vector<1x4x32xf32>,
    %c0_49 = arith.constant 0 : index
    %c0_50 = arith.constant 0 : index
    %c0_51 = arith.constant 0 : index
    %81 = vector.load %arg7[%c0_49, %c0_50, %c0_51] : memref<3x128x128xf32, #tpu.memory_space<vmem>>, vector<1x32x128xf32>
    %82 = vector.shape_cast %81 : vector<1x32x128xf32> to vector<32x128xf32>
    %cst_52 = arith.constant dense<0.000000e+00> : vector<4x128xf32>
    %83 = tpu.matmul %68, %82, %cst_52 {dimension_numbers = #tpu.dot_dimension_numbers<[1], [0], [0], [1], [0, 0, 1, 1], [], []>} : vector<4x32xf32>, vector<32x128xf32>, vector<4x128xf32> -> vector<4x128xf32>
    %c2_53 = arith.constant 2 : index
    %c0_54 = arith.constant 0 : index
    %84 = vector.load %arg6[%c2_53, %c0_54] : memref<8x128xf32, #tpu.memory_space<vmem>>, vector<1x128xf32>
    %85 = vector.broadcast %84 : vector<1x128xf32> to vector<4x128xf32>
    %86 = arith.addf %83, %85 : vector<4x128xf32>
    %cst_55 = arith.constant 0.000000e+00 : f32
    %87 = vector.broadcast %cst_55 : f32 to vector<4x128xf32>
    %88 = arith.cmpf ogt, %86, %87 : vector<4x128xf32>
    %89 = math.exp %86 : vector<4x128xf32>
    %cst_56 = arith.constant 1.000000e+00 : f32
    %90 = vector.broadcast %cst_56 : f32 to vector<4x128xf32>
    %91 = arith.subf %89, %90 : vector<4x128xf32>
    %92 = arith.select %88, %86, %91 : vector<4x128xi1>, vector<4x128xf32>
    %c1_57 = arith.constant 1 : index
    %c0_58 = arith.constant 0 : index
    %c0_59 = arith.constant 0 : index
    %93 = vector.load %arg7[%c1_57, %c0_58, %c0_59] : memref<3x128x128xf32, #tpu.memory_space<vmem>>, vector<1x128x128xf32>
    %94 = vector.shape_cast %93 : vector<1x128x128xf32> to vector<128x128xf32>
    %cst_60 = arith.constant dense<0.000000e+00> : vector<4x128xf32>
    %95 = tpu.matmul %92, %94, %cst_60 {dimension_numbers = #tpu.dot_dimension_numbers<[1], [0], [0], [1], [0, 0, 1, 1], [], []>} : vector<4x128xf32>, vector<128x128xf32>, vector<4x128xf32> -> vector<4x128xf32>
    %c3_61 = arith.constant 3 : index
    %c0_62 = arith.constant 0 : index
    %96 = vector.load %arg6[%c3_61, %c0_62] : memref<8x128xf32, #tpu.memory_space<vmem>>, vector<1x128xf32>
    %97 = vector.broadcast %96 : vector<1x128xf32> to vector<4x128xf32>
    %98 = arith.addf %95, %97 : vector<4x128xf32>
    %cst_63 = arith.constant 0.000000e+00 : f32
    %99 = vector.broadcast %cst_63 : f32 to vector<4x128xf32>
    %100 = arith.cmpf ogt, %98, %99 : vector<4x128xf32>
    %101 = math.exp %98 : vector<4x128xf32>
    %cst_64 = arith.constant 1.000000e+00 : f32
    %102 = vector.broadcast %cst_64 : f32 to vector<4x128xf32>
    %103 = arith.subf %101, %102 : vector<4x128xf32>
    %104 = arith.select %100, %98, %103 : vector<4x128xi1>, vector<4x128xf32>
    %c2_65 = arith.constant 2 : index
    %c0_66 = arith.constant 0 : index
    %c0_67 = arith.constant 0 : index
    %105 = vector.load %arg7[%c2_65, %c0_66, %c0_67] : memref<3x128x128xf32, #tpu.memory_space<vmem>>, vector<1x128x128xf32>
    %106 = vector.shape_cast %105 : vector<1x128x128xf32> to vector<128x128xf32>
    %cst_68 = arith.constant dense<0.000000e+00> : vector<4x128xf32>
    %107 = tpu.matmul %104, %106, %cst_68 {dimension_numbers = #tpu.dot_dimension_numbers<[1], [0], [0], [1], [0, 0, 1, 1], [], []>} : vector<4x128xf32>, vector<128x128xf32>, vector<4x128xf32> -> vector<4x128xf32>
    %c4 = arith.constant 4 : index
    %c0_69 = arith.constant 0 : index
    %108 = vector.load %arg6[%c4, %c0_69] : memref<8x128xf32, #tpu.memory_space<vmem>>, vector<1x128xf32>
    %109 = vector.broadcast %108 : vector<1x128xf32> to vector<4x128xf32>
    %110 = arith.addf %107, %109 : vector<4x128xf32>
    %c0_70 = arith.constant 0 : index
    %c0_71 = arith.constant 0 : index
    %c0_72 = arith.constant 0 : index
    %111 = vector.load %arg8[%c0_70, %c0_71, %c0_72] : memref<1x4x128xf32, #tpu.memory_space<vmem>>, vector<1x4x128xf32>
    %112 = vector.shape_cast %111 : vector<1x4x128xf32> to vector<4x128xf32>
    %113 = vector.shape_cast %110 : vector<4x128xf32> to vector<1x4x128xf32>
    tpu.vector_store %arg8[%c0_70, %c0_71, %c0_72], %113 {strides = array<i32>} : memref<1x4x128xf32, #tpu.memory_space<vmem>>, vector<1x4x128xf32>,
    %c7_i32 = arith.constant 7 : i32
    %114 = arith.cmpi eq, %arg1, %c7_i32 : i32
    %115 = arith.extui %114 : i1 to i32
    %c0_i32_73 = arith.constant 0 : i32
    %116 = arith.cmpi ne, %115, %c0_i32_73 : i32
    scf.if %116 {
      %c0_74 = arith.constant 0 : index
      %c0_75 = arith.constant 0 : index
      %c0_76 = arith.constant 0 : index
      %117 = vector.load %arg11[%c0_74, %c0_75, %c0_76] : memref<2x4x32xf32, #tpu.memory_space<vmem>>, vector<2x4x32xf32>
      %c0_77 = arith.constant 0 : index
      %c0_78 = arith.constant 0 : index
      %c0_79 = arith.constant 0 : index
      %118 = vector.load %arg9[%c0_77, %c0_78, %c0_79] : memref<2x4x32xf32, #tpu.memory_space<vmem>>, vector<2x4x32xf32>
      tpu.vector_store %arg9[%c0_77, %c0_78, %c0_79], %117 {strides = array<i32>} : memref<2x4x32xf32, #tpu.memory_space<vmem>>, vector<2x4x32xf32>,
      %c0_80 = arith.constant 0 : index
      %c0_81 = arith.constant 0 : index
      %c0_82 = arith.constant 0 : index
      %119 = vector.load %arg12[%c0_80, %c0_81, %c0_82] : memref<2x4x32xf32, #tpu.memory_space<vmem>>, vector<2x4x32xf32>
      %c0_83 = arith.constant 0 : index
      %c0_84 = arith.constant 0 : index
      %c0_85 = arith.constant 0 : index
      %120 = vector.load %arg10[%c0_83, %c0_84, %c0_85] : memref<2x4x32xf32, #tpu.memory_space<vmem>>, vector<2x4x32xf32>
      tpu.vector_store %arg10[%c0_83, %c0_84, %c0_85], %119 {strides = array<i32>} : memref<2x4x32xf32, #tpu.memory_space<vmem>>, vector<2x4x32xf32>,
    } else {
    }
    return
  }
  func.func @transform_0(%arg0: i32, %arg1: i32) -> (i32, i32, i32) {
    %c0_i32 = arith.constant 0 : i32
    %c0_i32_0 = arith.constant 0 : i32
    return %arg1, %arg0, %c0_i32 : i32, i32, i32
  }
  func.func @transform_1(%arg0: i32, %arg1: i32) -> (i32, i32, i32) {
    %c0_i32 = arith.constant 0 : i32
    %c0_i32_0 = arith.constant 0 : i32
    %c0_i32_1 = arith.constant 0 : i32
    return %c0_i32, %arg0, %c0_i32_0 : i32, i32, i32
  }
  func.func @transform_2(%arg0: i32, %arg1: i32) -> (i32, i32, i32) {
    %c0_i32 = arith.constant 0 : i32
    %c0_i32_0 = arith.constant 0 : i32
    %c0_i32_1 = arith.constant 0 : i32
    return %c0_i32, %arg0, %c0_i32_0 : i32, i32, i32
  }
  func.func @transform_3(%arg0: i32, %arg1: i32) -> (i32, i32, i32) {
    %c0_i32 = arith.constant 0 : i32
    %c0_i32_0 = arith.constant 0 : i32
    %c0_i32_1 = arith.constant 0 : i32
    %c0_i32_2 = arith.constant 0 : i32
    return %c0_i32, %c0_i32_0, %c0_i32_1 : i32, i32, i32
  }
  func.func @transform_4(%arg0: i32, %arg1: i32) -> (i32, i32) {
    %c0_i32 = arith.constant 0 : i32
    %c0_i32_0 = arith.constant 0 : i32
    %c0_i32_1 = arith.constant 0 : i32
    return %c0_i32, %c0_i32_0 : i32, i32
  }
  func.func @transform_5(%arg0: i32, %arg1: i32) -> (i32, i32, i32) {
    %c0_i32 = arith.constant 0 : i32
    %c0_i32_0 = arith.constant 0 : i32
    %c0_i32_1 = arith.constant 0 : i32
    %c0_i32_2 = arith.constant 0 : i32
    return %c0_i32, %c0_i32_0, %c0_i32_1 : i32, i32, i32
  }
  func.func @transform_6(%arg0: i32, %arg1: i32) -> (i32, i32, i32) {
    %c0_i32 = arith.constant 0 : i32
    %c0_i32_0 = arith.constant 0 : i32
    return %arg1, %arg0, %c0_i32 : i32, i32, i32
  }
  func.func @transform_7(%arg0: i32, %arg1: i32) -> (i32, i32, i32) {
    %c0_i32 = arith.constant 0 : i32
    %c0_i32_0 = arith.constant 0 : i32
    %c0_i32_1 = arith.constant 0 : i32
    return %c0_i32, %arg0, %c0_i32_0 : i32, i32, i32
  }
  func.func @transform_8(%arg0: i32, %arg1: i32) -> (i32, i32, i32) {
    %c0_i32 = arith.constant 0 : i32
    %c0_i32_0 = arith.constant 0 : i32
    %c0_i32_1 = arith.constant 0 : i32
    return %c0_i32, %arg0, %c0_i32_0 : i32, i32, i32
  }
}

</mosaic_0001>

<bundles_post_ra>
// kernel: policy_rollout.1
= control target key start
LH: loop header
LB: loop body
LE: loop exit
PB: predicated region body
PF: predicated region fallthrough
CT: control target
= control target key end

     0   :  { %s1849_s0 = inlined_call_operand.hbm [shape: f32[8,4,32], index: 0, kind: input, shape index: {}]   ;;  %s1850_s1 = inlined_call_operand.hbm [shape: f32[2,4,32], index: 1, kind: input, shape index: {}]   ;;  %s1851_s2 = inlined_call_operand.hbm [shape: f32[2,4,32], index: 2, kind: input, shape index: {}]   ;;  %s1852_s3 = inlined_call_operand.hbm [shape: f32[4,32,128], index: 3, kind: input, shape index: {}]   ;;  %s1853_s4 = inlined_call_operand.hbm [shape: f32[8,128], index: 4, kind: input, shape index: {}]   ;;  %s1854_s5 = inlined_call_operand.hbm [shape: f32[3,128,128], index: 5, kind: input, shape index: {}]   ;;  %s1855_s6 = inlined_call_operand.hbm [shape: f32[8,4,128], index: 6, kind: output, shape index: {0}]   ;;  %s1856_s7 = inlined_call_operand.hbm [shape: f32[2,4,32], index: 7, kind: output, shape index: {1}]   ;;  %s1857_s8 = inlined_call_operand.hbm [shape: f32[2,4,32], index: 8, kind: output, shape index: {2}]  }
   0x1   :  { %1859 = sst [smem:[#allocation25_spill]] %s1849_s0 }
   0x2   :  { %1860 = sst [smem:[#allocation26_spill]] %s1850_s1 }
   0x3   :  { %1861 = sst [smem:[#allocation27_spill]] %s1851_s2 }
   0x4   :  { %1862 = sst [smem:[#allocation28_spill]] %s1852_s3 }
   0x5   :  { %1863 = sst [smem:[#allocation29_spill]] %s1853_s4 }
   0x6   :  { %1864 = sst [smem:[#allocation30_spill]] %s1854_s5 }
   0x7   :  { %14 = vsyncpa [#allocation5], 0 }
   0x8   :  { %16 = vsyncpa [#allocation5 + $0x1], 0 }
   0x9   :  { %17 = vsyncpa [#allocation8], 0 }
   0xa   :  { %18 = vsyncpa [#allocation11], 0 }
   0xb   :  { %19 = vsyncpa [#allocation14], 0 }
   0xc   :  { %20 = vsyncpa [#allocation6], 0 }
   0xd   :  { %22 = vsyncpa [#allocation6 + $0x1], 0 }
   0xe   :  { %23 = vsyncpa [#allocation17], 0  ;;  %s1612_s27 = smov 0   ;;  %s1614_s28 = smov 0  }
   0xf   :  { %s1616_s29 = smov 0   ;;  %s1618_s30 = smov 0  }
  0x10   :  { %s1620_s9 = smov 0   ;;  %s1622_s10 = smov 0  }
  0x11 LB: > { %s1858_s11 = sadd.s32 4294967295, %s1550_s10   ;;  %p1022_p0 = scmp.ge.s32.totalorder %s1550_s10, 1  ;;  %s1550_s10 = sphi %s1622_s10, %s29_s10   ;;  %s1546_s9 = sphi %s1620_s9, %s1884_s9   ;;  %s1542_s30 = sphi %s1618_s30, %s1883_s30   ;;  %s1538_s29 = sphi %s1616_s29, %s1882_s29   ;;  %s1534_s28 = sphi %s1614_s28, %s1881_s28   ;;  %s1530_s27 = sphi %s1612_s27, %s1880_s27  }
  0x12   : > { %p1646_p1 = scmp.eq.s32.totalorder %s1858_s11, 0  ;;  %p269_p2 = scmp.lt.s32.totalorder %s1550_s10, 9 }
  0x13   : > { %s1866_s1 = sld [smem:[#allocation26_spill]]  ;;  %s1552_s17 = smov [#allocation7]  }
  0x14   : > { %p1654_p3 = pnand %p1022_p0, %p269_p2  ;;  %s284_s18 = sshll.u32 %s1552_s17, 4  ;;  %s285_s18 = int_to_ptr.vmem [resolvable:$true] %s284_s18 }
  0x15   : > { %s1869_s3 = sld [smem:[#allocation28_spill]]  ;;  %s1553_s23 = smov 64  }
  0x16   : > { %p1092_p4 = pneg %p1654_p3  ;;  %s1554_s24 = smov 4  }
  0x17   : > { %s1555_s25 = smov [#allocation10]   ;;  %s1556_s13 = smov 128  }
  0x18   : > { %p1662_p5 = pnand %p1092_p4, %p1646_p1  ;;  %s314_s26 = sshll.u32 %s1555_s25, 4  ;;  %s315_s26 = int_to_ptr.vmem [resolvable:$true] %s314_s26 }
  0x19   : > { %s282_s15 = sshll.u32 %s1866_s1, 4  ;;  %s1557_s14 = smov 8   ;;  %s283_s15 = int_to_ptr.hbm [resolvable:$true] %s282_s15 }
  0x1a   : > { %1095 = dma.hbm_to_vmem [thread:$0]  (!%p1662_p5), %s283_s15, 128, %s285_s18, [#allocation8], %s1553_s23, %s1553_s23, %s1554_s24  }
  0x1b   : > { %s312_s22 = sshll.u32 %s1869_s3, 4  ;;  %s1870_s2 = sld [smem:[#allocation27_spill]]  ;;  %s313_s22 = int_to_ptr.hbm [resolvable:$true] %s312_s22 }
  0x1c   : > { %1101 = dma.hbm_to_vmem [thread:$0]  (!%p1662_p5), %s313_s22, 2048, %s315_s26, [#allocation11], %s1556_s13, %s1556_s13, %s1557_s14  }
  0x1d   : > { %s1558_s21 = smov [#allocation9]   ;;  %s1871_s4 = sld [smem:[#allocation29_spill]] }
  0x1e   : > { %s300_s1 = sshll.u32 %s1558_s21, 4  ;;  %s1559_s11 = smov [#allocation12]   ;;  %s301_s1 = int_to_ptr.vmem [resolvable:$true] %s300_s1 }
  0x1f   : > { %s329_s22 = sshll.u32 %s1559_s11, 4  ;;  %s1872_s5 = sld [smem:[#allocation30_spill]]  ;;  %s330_s22 = int_to_ptr.vmem [resolvable:$true] %s329_s22 }
  0x20   : > { %s50_s15 = sadd.s32 1, %s1538_s29  ;;  %p57_p7 = scmp.ne.s32.totalorder %s1538_s29, %s1534_s28 }
  0x21   : > { %s298_s20 = sshll.u32 %s1870_s2, 4  ;;  %p58_p8 = scmp.eq.s32.totalorder %s1550_s10, 0  ;;  %s299_s20 = int_to_ptr.hbm [resolvable:$true] %s298_s20 }
  0x22   : > { %1098 = dma.hbm_to_vmem [thread:$0]  (!%p1662_p5), %s299_s20, 128, %s301_s1, [#allocation8], %s1553_s23, %s1553_s23, %s1554_s24  }
  0x23   : > { %s327_s25 = sshll.u32 %s1871_s4, 4  ;;  %s1560_s1 = smov [#allocation13]   ;;  %s328_s25 = int_to_ptr.hbm [resolvable:$true] %s327_s25 }
  0x24   : > { %1104 = dma.hbm_to_vmem [thread:$0]  (!%p1662_p5), %s328_s25, 128, %s330_s22, [#allocation11]  }
  0x25   : > { %s338_s21 = sshll.u32 %s1872_s5, 4  ;;  %s340_s23 = sshll.u32 %s1560_s1, 4  ;;  %s339_s21 = int_to_ptr.hbm [resolvable:$true] %s338_s21  ;;  %s341_s23 = int_to_ptr.vmem [resolvable:$true] %s340_s23 }
  0x26   : > { %1107 = dma.hbm_to_vmem [thread:$0]  (!%p1662_p5), %s339_s21, 6144, %s341_s23, [#allocation14], %s1556_s13, %s1556_s13, %s1557_s14  }
  0x27   : > { %s1021_s24 = sadd.s32 4294967294, %s1550_s10   ;;  %s38_s20 = sadd.s32 1, %s1546_s9 }
  0x28   : > { %p39_p6 = scmp.ge.s32.totalorder %s38_s20, 8  ;;  %p63_p9 = scmp.ne.s32.totalorder %s1534_s28, %s1530_s27 }
  0x29   : > { %p1698_p10 = por %p58_p8, %p57_p7  ;;  %s1875_s14 = sadd.s32 4294967295, %s1550_s10  }
  0x2a   : > { %s1886_s20 = smov (%p39_p6, %s38_s20), 0  ;;  %p1704_p11 = por %p1646_p1, %p63_p9 }
  0x2b   : > { %s45_s13 = ssub.s32 %s1546_s9, %s1886_s20  ;;  %p1712_p12 = scmp.eq.s32.totalorder %s1875_s14, 7 }
  0x2c   : > { %p48_p13 = scmp.eq.s32.totalorder %s45_s13, 0  ;;  %p210_p0 = scmp.eq.s32.totalorder %s1021_s24, 7 }
  0x2d   : > { %p1718_p2 = por %p1712_p12, %p57_p7  ;;  %p1121_p4 = scmp.lt.s32.totalorder %s1550_s10, 8 }
  0x2e   : > { %s1724_s22 = scalar_select %p48_p13, %s1538_s29, %s50_s15  }
  0x2f   : > { %p1726_p5 = por %p210_p0, %p63_p9  ;;  %s354_s17 = sand.u32 1, %s1538_s29  }
  0x30   : > { %s1029_s21 = sshll.u32 %s354_s17, 2  ;;  %s1030_s1 = sshll.u32 %s1546_s9, 2 }
  0x31   : > { %s1879_s0 = sld [smem:[#allocation25_spill]]  ;;  %s358_s24 = scalar_lea.vmem [#allocation4], %s1029_s21 }
  0x32   : > { %s367_s2 = sshll.u32 %s358_s24, 4  ;;  %p1109_p6 = pnand %p1121_p4, %p1698_p10  ;;  %s368_s2 = int_to_ptr.vmem [resolvable:$true] %s367_s2 }
  0x33   : > { %s355_s15 = scalar_lea.sflag [#allocation5], %s354_s17  ;;  %s1740_s4 = sand.u32 (!%p1654_p3), 1, %s1534_s28  }
  0x34   : > { %s1032_s23 = sshll.u32 (!%p1654_p3), %s1740_s4, 2 }
  0x35   : > { %376 = sbr.rel (%p1654_p3) target bundleno = 1737 (0x6c9), region = 44  ;;  %s1744_s21 = scalar_lea.vmem (!%p1654_p3), [#allocation4], %s1032_s23 }
  0x37   : > { %s363_s13 = scalar_lea.hbm %s1879_s0, %s1030_s1  ;;  %s379_s1 = scalar_lea.sflag (!%p1654_p3), [#allocation5], %s1740_s4 }
  0x38   : > { %s365_s3 = sshll.u32 %s363_s13, 4  ;;  %s366_s3 = int_to_ptr.hbm [resolvable:$true] %s365_s3 }
  0x39   : > { %1111 = dma.hbm_to_vmem [thread:$0]  (!%p1109_p6), %s366_s3, 64, %s368_s2, %s355_s15  }
  0x3a   : > { %1505 = dma.done.wait (%p1704_p11), %s379_s1, 64  }
  0x3b   : > { %1507 = vsyncadd (%p1704_p11), %s379_s1, 4294967232 }
  0x3c   : > { %1509 = dma.done.wait (%p1646_p1), [#allocation8], 256  }
  0x3d   : > { %1511 = vsyncadd (%p1646_p1), [#allocation8], 4294967040 }
  0x3e   : > { %1513 = dma.done.wait (%p1646_p1), [#allocation11], 2176  }
  0x3f   : > { %1515 = vsyncadd (%p1646_p1), [#allocation11], 4294965120 }
  0x40   : > { %1517 = dma.done.wait (%p1646_p1), [#allocation14], 6144  }
  0x41   : > { %1519 = vsyncadd (%p1646_p1), [#allocation14], 4294961152  ;;  %s1762_s2 = scalar_lea.vmem [#allocation15], %s1032_s23  ;;  %p1039_p3 = scmp.ne.s32.totalorder %s1542_s30, 0 }
  0x43   : > { %444 = sbr.rel (%p1039_p3) target bundleno = 77 (0x4d), region = 72 }
  0x48   : > { %v445_v0 = vld [vmem:[#allocation7] sm:$0xf]  ;;  %vm447_vm0 = vcmask 257024   ;;  %v446_v1 = vld [vmem:[#allocation7 + $0x4] sm:$0xf] }
  0x49   : > { %448 = vst.msk [vmem:[#allocation2] sm:$0xf] %vm447_vm0, %v445_v0  ;;  %v450_v2 = vld [vmem:[#allocation9] sm:$0xf]  ;;  %v451_v3 = vld [vmem:[#allocation9 + $0x4] sm:$0xf] }
  0x4a   : > { %449 = vst.msk [vmem:[#allocation2 + $0x4] sm:$0xf] %vm447_vm0, %v446_v1 }
  0x4b   : > { %452 = vst.msk [vmem:[#allocation3] sm:$0xf] %vm447_vm0, %v450_v2 }
  0x4c   : > { %453 = vst.msk [vmem:[#allocation3 + $0x4] sm:$0xf] %vm447_vm0, %v451_v3 }
  0x4d PF: > { %v460_v4 = vld [vmem:[#allocation10 + $0x18] sm:$0xff]  ;;  %v459_v5 = vld [vmem:[#allocation10 + $0x10] sm:$0xff]  ;;  %v458_v7 = vld [vmem:[#allocation10 + $0x8] sm:$0xff]  ;;  %vm467_vm1 = vcmask 261120   ;;  %s1561_s3 = smov 64   ;;  %s1562_s12 = smov 32  }
  0x4e   : > { %506 = vmatpush.msra.mxu3 %v460_v4  ;;  %v465_v6 = vld [vmem:[#allocation10 + $0x38] sm:$0xff]  ;;  %v457_v8 = vld [vmem:[#allocation10] sm:$0xff]  ;;  %v464_v9 = vld [vmem:[#allocation10 + $0x30] sm:$0xff]  ;;  %vm666_vm6 = vcmask 257024   ;;  %s1563_s16 = smov 96   ;;  %p1051_p1 = scmp.ne.s32.totalorder %s1542_s30, 7 }
  0x4f   : > { %483 = vmatpush.msra.mxu0 %v465_v6  ;;  %v463_v10 = vld [vmem:[#allocation10 + $0x28] sm:$0xff]  ;;  %v462_v12 = vld [vmem:[#allocation10 + $0x20] sm:$0xff]  ;;  %v566_v42 = vld [vmem:[#allocation10 + $0x58] sm:$0xff] }
  0x50   : > { %507 = vmatpush.msra.mxu3 %v459_v5  ;;  %v454_v11 = vld [vmem:[%s1744_s21] sm:$0xf]  ;;  %v455_v13 = vld [vmem:[#allocation2] sm:$0xf]  ;;  %v1195_v15 = vld [vmem:[#allocation12] ss:$0 sm:$0xff] }
  0x51   : > { %484 = vmatpush.msra.mxu0 %v464_v9  ;;  %v565_v43 = vld [vmem:[#allocation10 + $0x50] sm:$0xff]  ;;  %v571_v44 = vld [vmem:[#allocation10 + $0x78] sm:$0xff]  ;;  %v564_v45 = vld [vmem:[#allocation10 + $0x48] sm:$0xff] }
  0x52   : > { %508 = vmatpush.msra.mxu3 %v458_v7  ;;  %v456_v34 = vld [vmem:[#allocation3] sm:$0xf]  ;;  %v570_v49 = vld [vmem:[#allocation10 + $0x70] sm:$0xff]  ;;  %v569_v50 = vld [vmem:[#allocation10 + $0x68] sm:$0xff] }
  0x53   : > { %485 = vmatpush.msra.mxu0 %v463_v10  ;;  %v563_v46 = vld [vmem:[#allocation10 + $0x40] sm:$0xff]  ;;  %v559_v53 = vld [vmem:[#allocation2 + $0x4] sm:$0xf] }
  0x54   : > { %509 = vmatpush.msra.mxu3 %v457_v8  ;;  %v561_v51 = vld [vmem:[#allocation3 + $0x4] sm:$0xf]  ;;  %v1196_v56 = vld [vmem:[#allocation12 + $0x1] ss:$0 sm:$0xff] }
  0x55   : > { %1041 = vmatmul.msk.f32.vlgmr.msra.gmra.mxu3 %vm467_vm1, %v454_v11  ;;  %486 = vmatpush.msra.mxu0 %v462_v12  ;;  %v568_v52 = vld [vmem:[#allocation10 + $0x60] sm:$0xff] }
  0x56   : > { %1040 = vmatmul.msk.f32.vlgmr.msra.gmra.mxu0 %vm467_vm1, %v455_v13  ;;  %613 = vmatpush.msrb.mxu3 %v566_v42  ;;  %v717_v42 = vld [vmem:[#allocation13 + $0x80] sm:$0xff] }
  0x57   : > { %588 = vmatpush.msrb.mxu0 %v571_v44  ;;  %v775_v44 = vld [vmem:[#allocation13 + $0x170] sm:$0xff] }
  0x58   : > { %614 = vmatpush.msrb.mxu3 %v565_v43  ;;  %v776_v43 = vld [vmem:[#allocation13 + $0x178] sm:$0xff] }
  0x59   : > { %589 = vmatpush.msrb.mxu0 %v570_v49  ;;  %779 = vmatpush.msra.mxu2 %v776_v43  ;;  %v770_v49 = vld [vmem:[#allocation13 + $0x148] sm:$0xff] }
  0x5a   : > { %615 = vmatpush.msrb.mxu3 %v564_v45  ;;  %v774_v45 = vld [vmem:[#allocation13 + $0x168] sm:$0xff] }
  0x5b   : > { %590 = vmatpush.msrb.mxu0 %v569_v50  ;;  %780 = vmatpush.msra.mxu2 %v775_v44  ;;  %v769_v50 = vld [vmem:[#allocation13 + $0x140] sm:$0xff] }
  0x5c   : > { %616 = vmatpush.msrb.mxu3 %v563_v46  ;;  %v773_v46 = vld [vmem:[#allocation13 + $0x160] sm:$0xff] }
  0x5d   : > { %591 = vmatpush.msrb.mxu0 %v568_v52  ;;  %781 = vmatpush.msra.mxu2 %v774_v45 }
  0x5e   : > { %1044 = vmatmul.msk.f32.vlgmr.msrb.gmra.mxu0 %vm467_vm1, %v559_v53 }
  0x5f   : > { %782 = vmatpush.msra.mxu2 %v773_v46 }
  0xd3   : > { %v488_v14 = vpop.f32.mrf.mxu0 }
  0xd8   : > { %v511_v16 = vpop.f32.mrf.mxu3 }
  0xd9   : > { %v512_v17 = vadd.f32 %v511_v16, %v488_v14 }
  0xdb   : > { %v515_v18 = vadd.f32 %v1195_v15, %v512_v17  ;;  %v593_v55 = vpop.f32.mrf.mxu0 }
  0xdd   : > { %v1042_v19 = vmul.f32 -1.442695, %v515_v18 }
  0xdf   : > { %1200 = vpow2.f32 %v1042_v19  ;;  %v686_v19 = vld [vmem:[#allocation13 + $0x18] sm:$0xff] }
  0xe0   : > { %703 = vmatpush.msra.mxu0 %v686_v19 }
  0xe5   : > { %v1201_v20 = vpop.eup %1200 }
  0xe6   : > { %v519_v21 = vadd.f32 1.0, %v1201_v20  ;;  %v685_v20 = vld [vmem:[#allocation13 + $0x10] sm:$0xff] }
  0xe7   : > { %704 = vmatpush.msra.mxu0 %v685_v20 }
  0xe8   : > { %1202 = vrcp.f32 %v519_v21  ;;  %v531_v25 = vand.u32 2147483648, %v519_v21  ;;  %v529_v27 = vand.u32 2147483647, %v519_v21  ;;  %vm525_vm3 = vweird.f32 %v519_v21 }
  0xea   : > { %v532_v29 = vor.u32 1.1754944e-38, %v531_v25  ;;  %vm530_vm5 = vcmp.eq.f32.partialorder %v529_v27, 8.507059e+37  ;;  %v731_v27 = vld [vmem:[#allocation13 + $0xf0] sm:$0xff] }
  0xee   : > { %v1203_v22 = vpop.eup %1202 }
  0xef   : > { %v521_v23 = vmul.f32 %v1203_v22, %v519_v21  ;;  %vm526_vm2 = vweird.f32 %v1203_v22  ;;  %v684_v21 = vld [vmem:[#allocation13 + $0x8] sm:$0xff] }
  0xf0   : > { %vm527_vm4 = vmor %vm525_vm3, %vm526_vm2  ;;  %705 = vmatpush.msra.mxu0 %v684_v21 }
  0xf1   : > { %v522_v24 = vsub.f32 1.0, %v521_v23 }
  0xf3   : > { %v523_v26 = vmul.f32 %v1203_v22, %v522_v24 }
  0xf5   : > { %v524_v28 = vadd.f32 %v1203_v22, %v523_v26  ;;  %v732_v26 = vld [vmem:[#allocation13 + $0xf8] sm:$0xff] }
  0xf6   : > { %735 = vmatpush.msra.mxu1 %v732_v26 }
  0xf7   : > { %v528_v30 = vsel %vm527_vm4, %v1203_v22, %v524_v28  ;;  %v683_v22 = vld [vmem:[#allocation13] sm:$0xff]  ;;  %v730_v28 = vld [vmem:[#allocation13 + $0xe8] sm:$0xff] }
  0xf8   : > { %v533_v31 = vsel %vm530_vm5, %v532_v29, %v528_v30  ;;  %706 = vmatpush.msra.mxu0 %v683_v22  ;;  %736 = vmatpush.msra.mxu1 %v731_v27  ;;  %v729_v29 = vld [vmem:[#allocation13 + $0xe0] sm:$0xff]  ;;  %v728_v30 = vld [vmem:[#allocation13 + $0xd8] sm:$0xff] }
  0xf9   : > { %v535_v32 = vmul.f32 2.0, %v533_v31 }
  0xfa   : > { %737 = vmatpush.msra.mxu1 %v730_v28 }
  0xfb   : > { %v1043_v33 = vadd.f32 -1.0, %v535_v32  ;;  %v726_v32 = vld [vmem:[#allocation13 + $0xc8] sm:$0xff] }
  0xfc   : > { %738 = vmatpush.msra.mxu1 %v729_v29 }
  0xfd   : > { %543 = vrot.lane.b32.xlu0 %v1043_v33, %s1561_s3  ;;  %v725_v33 = vld [vmem:[#allocation13 + $0xc0] sm:$0xff] }
  0xfe   : > { %739 = vmatpush.msra.mxu1 %v728_v30 }
 0x105   : > { %538 = vrot.lane.b32.xlu0 %v456_v34, %s1562_s12 }
 0x10d   : > { %645 = vrot.lane.b32.xlu0 %v561_v51, %s1562_s12  ;;  %v1197_v51 = vld [vmem:[#allocation12 + $0x2] ss:$0 sm:$0xff] }
 0x16f   : > { %v544_v35 = vpop.permute.xlu0 %543 }
 0x170   : > { %v546_v36 = vmul.f32 %v544_v35, %v533_v31  ;;  %v724_v35 = vld [vmem:[#allocation13 + $0xb8] sm:$0xff] }
 0x172   : > { %548 = vrot.lane.b32.xlu1 %v546_v36, %s1562_s12  ;;  %v723_v36 = vld [vmem:[#allocation13 + $0xb0] sm:$0xff] }
 0x177   : > { %v539_v37 = vpop.permute.xlu0 %538 }
 0x178   : > { %v541_v38 = vmul.f32 %v539_v37, %v533_v31  ;;  %v722_v37 = vld [vmem:[#allocation13 + $0xa8] sm:$0xff] }
 0x17f   : > { %v646_v13 = vpop.permute.xlu0 %645 }
 0x1e4   : > { %v549_v39 = vpop.permute.xlu1 %548 }
 0x1e5   : > { %v551_v40 = vadd.f32 %v549_v39, %v541_v38  ;;  %v721_v38 = vld [vmem:[#allocation13 + $0xa0] sm:$0xff]  ;;  %v720_v39 = vld [vmem:[#allocation13 + $0x98] sm:$0xff] }
 0x1e7   : > { %1204 = vtanh.f32 %v551_v40 }
 0x1ed   : > { %v1205_v41 = vpop.eup %1204 }
 0x1ee   : > { %554 = vrot.lane.b32.xlu1 %v1205_v41, %s1561_s3  ;;  %v718_v41 = vld [vmem:[#allocation13 + $0x88] sm:$0xff] }
 0x260   : > { %v555_v47 = vpop.permute.xlu1 %554 }
 0x261   : > { %v557_v48 = vmul.f32 %v555_v47, %v533_v31  ;;  %v727_v31 = vld [vmem:[#allocation13 + $0xd0] sm:$0xff]  ;;  %v772_v47 = vld [vmem:[#allocation13 + $0x158] sm:$0xff] }
 0x262   : > { %740 = vmatpush.msra.mxu1 %v727_v31  ;;  %783 = vmatpush.msra.mxu2 %v772_v47 }
 0x263   : > { %597 = vrot.lane.b32.xlu2 %v557_v48, %s1562_s12  ;;  %v771_v48 = vld [vmem:[#allocation13 + $0x150] sm:$0xff] }
 0x264   : > { %741 = vmatpush.msra.mxu1 %v726_v32  ;;  %784 = vmatpush.msra.mxu2 %v771_v48 }
 0x266   : > { %742 = vmatpush.msra.mxu1 %v725_v33  ;;  %785 = vmatpush.msra.mxu2 %v770_v49 }
 0x268   : > { %743 = vmatpush.msra.mxu1 %v724_v35  ;;  %786 = vmatpush.msra.mxu2 %v769_v50 }
 0x26a   : > { %744 = vmatpush.msra.mxu1 %v723_v36 }
 0x26c   : > { %745 = vmatpush.msra.mxu1 %v722_v37 }
 0x26e   : > { %746 = vmatpush.msra.mxu1 %v721_v38 }
 0x270   : > { %747 = vmatpush.msra.mxu1 %v720_v39 }
 0x2bd   : > { %v598_v54 = vpop.permute.xlu2 %597 }
 0x2be   : > { %667 = vst.msk [vmem:[#allocation2] sm:$0xf] %vm666_vm6, %v598_v54  ;;  %1045 = vmatmul.msk.f32.vlgmr.msrb.gmra.mxu3 %vm467_vm1, %v598_v54 }
 0x341   : > { %v618_v57 = vpop.f32.mrf.mxu3 }
 0x342   : > { %v619_v58 = vadd.f32 %v618_v57, %v593_v55 }
 0x344   : > { %v622_v59 = vadd.f32 %v1196_v56, %v619_v58  ;;  %v768_v58 = vld [vmem:[#allocation13 + $0x138] sm:$0xff] }
 0x345   : > { %787 = vmatpush.msra.mxu2 %v768_v58 }
 0x346   : > { %v1046_v60 = vmul.f32 -1.442695, %v622_v59  ;;  %v767_v59 = vld [vmem:[#allocation13 + $0x130] sm:$0xff] }
 0x347   : > { %788 = vmatpush.msra.mxu2 %v767_v59 }
 0x348   : > { %1206 = vpow2.f32 %v1046_v60  ;;  %v766_v60 = vld [vmem:[#allocation13 + $0x128] sm:$0xff] }
 0x349   : > { %789 = vmatpush.msra.mxu2 %v766_v60 }
 0x34e   : > { %v1207_v61 = vpop.eup %1206 }
 0x34f   : > { %v626_v62 = vadd.f32 1.0, %v1207_v61  ;;  %v765_v61 = vld [vmem:[#allocation13 + $0x120] sm:$0xff] }
 0x350   : > { %790 = vmatpush.msra.mxu2 %v765_v61 }
 0x351   : > { %1208 = vrcp.f32 %v626_v62  ;;  %v638_v2 = vand.u32 2147483648, %v626_v62  ;;  %v636_v4 = vand.u32 2147483647, %v626_v62  ;;  %vm632_vm8 = vweird.f32 %v626_v62 }
 0x353   : > { %v639_v6 = vor.u32 1.1754944e-38, %v638_v2  ;;  %vm637_vm10 = vcmp.eq.f32.partialorder %v636_v4, 8.507059e+37  ;;  %v1198_v2 = vld [vmem:[#allocation12 + $0x3] ss:$0 sm:$0xff] }
 0x357   : > { %v1209_v63 = vpop.eup %1208 }
 0x358   : > { %v628_v0 = vmul.f32 %v1209_v63, %v626_v62  ;;  %vm633_vm7 = vweird.f32 %v1209_v63  ;;  %v764_v62 = vld [vmem:[#allocation13 + $0x118] sm:$0xff] }
 0x359   : > { %vm634_vm9 = vmor %vm632_vm8, %vm633_vm7  ;;  %791 = vmatpush.msra.mxu2 %v764_v62 }
 0x35a   : > { %v629_v1 = vsub.f32 1.0, %v628_v0  ;;  %v762_v0 = vld [vmem:[#allocation13 + $0x108] sm:$0xff] }
 0x35c   : > { %v630_v3 = vmul.f32 %v1209_v63, %v629_v1  ;;  %v761_v1 = vld [vmem:[#allocation13 + $0x100] sm:$0xff] }
 0x35e   : > { %v631_v5 = vadd.f32 %v1209_v63, %v630_v3 }
 0x360   : > { %v635_v7 = vsel %vm634_vm9, %v1209_v63, %v631_v5  ;;  %v763_v63 = vld [vmem:[#allocation13 + $0x110] sm:$0xff] }
 0x361   : > { %v640_v8 = vsel %vm637_vm10, %v639_v6, %v635_v7  ;;  %792 = vmatpush.msra.mxu2 %v763_v63 }
 0x362   : > { %v642_v9 = vmul.f32 2.0, %v640_v8  ;;  %v648_v14 = vmul.f32 %v646_v13, %v640_v8 }
 0x363   : > { %793 = vmatpush.msra.mxu2 %v762_v0 }
 0x364   : > { %v1047_v10 = vadd.f32 -1.0, %v642_v9  ;;  %v1199_v9 = vld [vmem:[#allocation12 + $0x4] ss:$0 sm:$0xff] }
 0x365   : > { %794 = vmatpush.msra.mxu2 %v761_v1 }
 0x366   : > { %650 = vrot.lane.b32.xlu2 %v1047_v10, %s1561_s3 }
 0x3c0   : > { %v651_v11 = vpop.permute.xlu2 %650 }
 0x3c1   : > { %v653_v12 = vmul.f32 %v651_v11, %v640_v8 }
 0x3c3   : > { %655 = vrot.lane.b32.xlu1 %v653_v12, %s1562_s12 }
 0x3cb   : > { %674 = vrot.lane.b32.xlu1 %v551_v40, %s1563_s16  ;;  %v719_v40 = vld [vmem:[#allocation13 + $0x90] sm:$0xff] }
 0x3cc   : > { %748 = vmatpush.msra.mxu1 %v719_v40 }
 0x3ce   : > { %749 = vmatpush.msra.mxu1 %v718_v41 }
 0x3d0   : > { %750 = vmatpush.msra.mxu1 %v717_v42 }
 0x435   : > { %v656_v15 = vpop.permute.xlu1 %655 }
 0x436   : > { %v658_v16 = vadd.f32 %v656_v15, %v648_v14 }
 0x438   : > { %1210 = vtanh.f32 %v658_v16 }
 0x43d   : > { %v675_v17 = vpop.permute.xlu1 %674 }
 0x43e   : > { %v1211_v18 = vpop.eup %1210  ;;  %677 = vst.msk [vmem:[#allocation3] sm:$0xf] %vm666_vm6, %v675_v17 }
 0x43f   : > { %661 = vrot.lane.b32.xlu2 %v1211_v18, %s1561_s3 }
 0x447   : > { %679 = vrot.lane.b32.xlu2 %v658_v16, %s1563_s16 }
 0x499   : > { %v662_v23 = vpop.permute.xlu2 %661 }
 0x49a   : > { %v664_v24 = vmul.f32 %v662_v23, %v640_v8 }
 0x49c   : > { %669 = vrot.lane.b32.xlu0 %v664_v24, %s1562_s12 }
 0x4a1   : > { %v680_v25 = vpop.permute.xlu2 %679 }
 0x4a2   : > { %682 = vst.msk [vmem:[#allocation3 + $0x4] sm:$0xf] %vm666_vm6, %v680_v25 }
 0x50e   : > { %v670_v34 = vpop.permute.xlu0 %669 }
 0x50f   : > { %672 = vst.msk [vmem:[#allocation2 + $0x4] sm:$0xf] %vm666_vm6, %v670_v34  ;;  %1048 = vmatmul.msk.f32.vlgmr.msra.gmra.mxu0 %vm467_vm1, %v670_v34 }
 0x58c   : > { %v708_v52 = vpop.f32.mrf.mxu0 }
 0x58d   : > { %v709_v53 = vadd.f32 %v1197_v51, %v708_v52 }
 0x58f   : > { %v712_v54 = vmul.f32 1.442695, %v709_v53  ;;  %vm711_vm11 = vcmp.gt.f32.partialorder %v709_v53, 0.0 }
 0x591   : > { %1212 = vpow2.f32 %v712_v54 }
 0x597   : > { %v1213_v55 = vpop.eup %1212 }
 0x598   : > { %v1049_v56 = vadd.f32 -1.0, %v1213_v55 }
 0x59a   : > { %v715_v57 = vsel %vm711_vm11, %v709_v53, %v1049_v56 }
 0x59b   : > { %751 = vmatmul.f32.vlgmr.msra.gmra.mxu1 %v715_v57 }
 0x618   : > { %v752_v3 = vpop.f32.mrf.mxu1 }
 0x619   : > { %v753_v4 = vadd.f32 %v1198_v2, %v752_v3 }
 0x61b   : > { %v756_v5 = vmul.f32 1.442695, %v753_v4  ;;  %vm755_vm12 = vcmp.gt.f32.partialorder %v753_v4, 0.0 }
 0x61d   : > { %1214 = vpow2.f32 %v756_v5 }
 0x623   : > { %v1215_v6 = vpop.eup %1214 }
 0x624   : > { %v1050_v7 = vadd.f32 -1.0, %v1215_v6 }
 0x626   : > { %v759_v8 = vsel %vm755_vm12, %v753_v4, %v1050_v7 }
 0x627   : > { %795 = vmatmul.f32.vlgmr.msra.gmra.mxu2 %v759_v8 }
 0x6a9   : > { %803 = sbr.rel (%p1051_p1) target bundleno = 1715 (0x6b3), region = 76 }
 0x6aa   : > { %v796_v10 = vpop.f32.mrf.mxu2 }
 0x6ab   : > { %v797_v11 = vadd.f32 %v1199_v9, %v796_v10 }
 0x6ad   : > { %799 = vst [vmem:[%s1762_s2] sm:$0xf] %v797_v11 }
 0x6ae   : > { %v804_v12 = vld [vmem:[#allocation2] sm:$0xf]  ;;  %v805_v13 = vld [vmem:[#allocation2 + $0x4] sm:$0xf]  ;;  %v808_v14 = vld [vmem:[#allocation3] sm:$0xf] }
 0x6af   : > { %806 = vst.msk [vmem:[#allocation16] sm:$0xf] %vm666_vm6, %v804_v12  ;;  %v809_v15 = vld [vmem:[#allocation3 + $0x4] sm:$0xf] }
 0x6b0   : > { %807 = vst.msk [vmem:[#allocation16 + $0x4] sm:$0xf] %vm666_vm6, %v805_v13 }
 0x6b1   : > { %810 = vst.msk [vmem:[#allocation18] sm:$0xf] %vm666_vm6, %v808_v14 }
 0x6b2   : > { %811 = vst.msk [vmem:[#allocation18 + $0x4] sm:$0xf] %vm666_vm6, %v809_v15 }
 0x6b3 PF: > { %s1564_s18 = smov [#allocation16]   ;;  %s841_s13 = sshll.u32 %s1856_s7, 4  ;;  %s842_s13 = int_to_ptr.hbm [resolvable:$true] %s841_s13 }
 0x6b4   : > { %s839_s19 = sshll.u32 %s1564_s18, 4  ;;  %s1565_s24 = smov 4   ;;  %s840_s19 = int_to_ptr.vmem [resolvable:$true] %s839_s19 }
 0x6b5   : > { %1084 = dma.vmem_to_hbm [thread:$0]  (%p1712_p12), %s840_s19, 128, %s842_s13, [#allocation17], %s1561_s3, %s1561_s3, %s1565_s24  }
 0x6b6   : > { %s1053_s15 = sshll.u32 %s1542_s30, 2  ;;  %s826_s23 = sshll.u32 %s1762_s2, 4  ;;  %s827_s23 = int_to_ptr.vmem [resolvable:$true] %s826_s23 }
 0x6b7   : > { %s824_s12 = scalar_lea.hbm %s1855_s6, %s1053_s15  ;;  %s1566_s18 = smov [#allocation18]  }
 0x6b8   : > { %s828_s16 = sshll.u32 %s824_s12, 4  ;;  %s855_s17 = sshll.u32 %s1566_s18, 4  ;;  %s829_s16 = int_to_ptr.hbm [resolvable:$true] %s828_s16  ;;  %s856_s17 = int_to_ptr.vmem [resolvable:$true] %s855_s17 }
 0x6b9   : > { %s813_s14 = scalar_lea.sflag [#allocation6], %s1740_s4  ;;  %s1438_s0 = sshra.s32 %s829_s16, 4  ;;  %s1439_s0 = int_to_ptr.hbm [resolvable:$true] %s1438_s0 }
 0x6ba   : > { %s1440_s5 = scalar_lea.hbm %s1439_s0, 4  ;;  %s1444_s2 = scalar_lea.hbm %s1855_s6, 32 }
 0x6bb   : > { %p1441_p7 = scmp.ne.s32.totalorder %s1439_s0, %s1440_s5  ;;  %p1445_p10 = scmp.lt.s32.totalorder %s1439_s0, %s1855_s6 }
 0x6bc   : > { %p1446_p11 = scmp.lt.s32.totalorder %s1444_s2, %s1440_s5 }
 0x6bd   : > { %p1442_p8 = pnand %p1441_p7, %p1718_p2 }
 0x6be   : > { %p1447_p13 = por %p1446_p11, %p1445_p10 }
 0x6bf   : > { %p1443_p9 = pneg %p1442_p8 }
 0x6c1   : > { %p1448_p0 = pnand %p1447_p13, %p1443_p9 }
 0x6c3   : > { %1451 = shalt.err (!%p1448_p0)
}
 0x6c4   : > { %1082 = dma.vmem_to_hbm [thread:$0]  (%p1718_p2), %s827_s23, 64, %s829_s16, %s813_s14  }
 0x6c5   : > { %s857_s21 = sshll.u32 %s1857_s8, 4  ;;  %s858_s21 = int_to_ptr.hbm [resolvable:$true] %s857_s21 }
 0x6c6   : > { %1086 = dma.vmem_to_hbm [thread:$0]  (%p1712_p12), %s856_s17, 128, %s858_s21, [#allocation17], %s1561_s3, %s1561_s3, %s1565_s24  }
 0x6c7   : > { %1521 = dma.done.wait (%p1712_p12), [#allocation17], 256  }
 0x6c8   : > { %1523 = vsyncadd (%p1712_p12), [#allocation17], 4294967040 }
 0x6c9 PF: > { %p1131_p2 = scmp.ge.s32.totalorder %s1550_s10, 2  ;;  %s882_s0 = sand.u32 1, %s1530_s27  }
 0x6ca   : > { %s883_s5 = scalar_lea.sflag [#allocation6], %s882_s0 }
 0x6cb   : > { %p1113_p4 = pnand %p1131_p2, %p1726_p5 }
 0x6cd   : > { %p1114_p6 = pneg %p1113_p4 }
 0x6cf   : > { %1525 = dma.done.wait (%p1114_p6), %s883_s5, 64  }
 0x6d0   : > { %1527 = vsyncadd (%p1114_p6), %s883_s5, 4294967232  ;;  %s29_s10 = sadd.s32 1, %s1550_s10   ;;  %s1880_s27 = smov %s1534_s28 }
 0x6d1   : > { %p26_p3 = scmp.ge.s32.totalorder %s29_s10, 10   ;;  %s1881_s28 = smov %s1538_s29 }
 0x6d2   : > { %s1882_s29 = smov %s1724_s22  ;;  %s1883_s30 = smov %s1546_s9 }
 0x6d3   : > { %s1884_s9 = smov %s1886_s20  ;;  %28 = sbr.rel (!%p26_p3) target bundleno = 17 (0x11), region = 144 }
 0x6d8   :  { %889 = vsyncpa [#allocation5], 1 }
 0x6d9   :  { %891 = vsyncpa [#allocation5 + $0x1], 1 }
 0x6da   :  { %892 = vsyncpa [#allocation8], 1 }
 0x6db   :  { %893 = vsyncpa [#allocation11], 1 }
 0x6dc   :  { %894 = vsyncpa [#allocation14], 1 }
 0x6dd   :  { %895 = vsyncpa [#allocation6], 1 }
 0x6de   :  { %897 = vsyncpa [#allocation6 + $0x1], 1 }
 0x6df   :  { %898 = vsyncpa [#allocation17], 1 }

</bundles_post_ra>
